<compile_context>
chip_gen: v7x
topology: tpu7x:2x2x1
jax: 0.10.0
libtpu: 0.0.40
codegen_flags: <defaults>
</compile_context>

<pallas_src>
import functools

import jax
import jax.numpy as jnp
from jax.experimental import pallas as pl
from jax.experimental.pallas import tpu as pltpu


# ---------------------------- VMEM limit (per-generation) -------------------
def _vmem_limit_bytes():
    # v5e/v6e have 128 MiB VMEM per TensorCore, v7x only 64 MiB.  Leave
    # headroom; fall back to 48 MiB (safe everywhere) if the query fails.
    try:
        cap = int(pltpu.get_tpu_info().vmem_capacity_bytes)
        if cap < 32 * 1024 * 1024:
            raise ValueError("implausible VMEM capacity")
    except Exception:
        return 48 * 1024 * 1024
    return int(min(cap - 16 * 1024 * 1024, 100 * 1024 * 1024))


_VMEM_LIMIT = _vmem_limit_bytes()


# ------------------------------ im2col (JAX glue) ----------------------------
def _im2col(xp, ho, wo, oy, ox, sy, sx):
    """Gather 3x3 taps of a padded NHWC input into the channel axis.

    xp: (N, H+2, W+2, Cin) padded input.  Output positions are
    (oy + sy*i, ox + sx*j) for i<ho, j<wo.  Returns (N*ho*wo, 9*Cin),
    K ordered as (ky, kx, cin) to match w.reshape(9*Cin, Cout).
    """
    n, _, _, cin = xp.shape
    taps = []
    for ky in range(3):
        for kx in range(3):
            ys = oy + ky
            xs = ox + kx
            taps.append(xp[:, ys: ys + sy * (ho - 1) + 1: sy,
                           xs: xs + sx * (wo - 1) + 1: sx, :])
    cols = jnp.concatenate(taps, axis=-1)           # (N, ho, wo, 9*Cin)
    return cols.reshape(n * ho * wo, 9 * cin)


def _pad_k(xc, wm, k):
    """Zero-pad the contraction dim to a multiple of 32 (exact)."""
    kp = -(-k // 32) * 32
    if kp != k:
        xc = jnp.pad(xc, ((0, 0), (0, kp - k)))
        wm = jnp.pad(wm, ((0, kp - k), (0, 0)))
    return xc, wm, kp


def _pick_m_tile(m, cap=256):
    # Largest multiple-of-16 divisor of m that is <= cap; full m if m <= cap
    # or no such divisor exists (full-extent blocks are always legal).
    if m <= cap:
        return m
    t = cap - (cap % 16)
    while t >= 16:
        if m % t == 0:
            return t
        t -= 16
    return m


# ------------------------- conv 3x3 + bias + ReLU kernel ---------------------
def _conv_mm_kernel(x_ref, w_ref, b_ref, o_ref):
    # x_ref: (tm, K) bf16 im2col rows, w_ref: (K, Cout) bf16, b_ref: (1, Cout) f32.
    y = jnp.dot(x_ref[...], w_ref[...], preferred_element_type=jnp.float32)
    y = jnp.maximum(y + b_ref[...], 0.0)
    o_ref[...] = y.astype(o_ref.dtype)


def conv3x3_relu(x, w, b):
    # x: (N, H, W, Cin) bf16, w: (3, 3, Cin, Cout) bf16, b: (Cout,) f32
    n, h, wd, cin = x.shape
    cout = w.shape[-1]
    xp = jnp.pad(x, ((0, 0), (1, 1), (1, 1), (0, 0)))        # padding=1
    xc = _im2col(xp, h, wd, 0, 0, 1, 1)                       # (N*H*W, 9*Cin)
    wm = w.reshape(9 * cin, cout)
    xc, wm, kp = _pad_k(xc, wm, 9 * cin)
    m = n * h * wd
    tm = _pick_m_tile(m)
    out = pl.pallas_call(
        _conv_mm_kernel,
        out_shape=jax.ShapeDtypeStruct((m, cout), jnp.bfloat16),
        grid_spec=pltpu.PrefetchScalarGridSpec(
            num_scalar_prefetch=0,
            grid=(m // tm,),
            in_specs=[
                pl.BlockSpec((tm, kp), lambda i: (i, 0)),
                pl.BlockSpec((kp, cout), lambda i: (0, 0)),
                pl.BlockSpec((1, cout), lambda i: (0, 0)),
            ],
            out_specs=pl.BlockSpec((tm, cout), lambda i: (i, 0)),
        ),
        compiler_params=pltpu.CompilerParams(
            dimension_semantics=("parallel",),
            vmem_limit_bytes=_VMEM_LIMIT),
    )(xc, wm, b.reshape(1, cout))
    return out.reshape(n, h, wd, cout)


# ------------------ fused conv 3x3 + bias + ReLU + maxpool 2x2 ---------------
def _conv_mm_pool_kernel(x00_ref, x01_ref, x10_ref, x11_ref, w_ref, b_ref,
                         o_ref):
    # Each x*_ref: (tm, K) bf16 im2col rows at one of the four 2x2-window tap
    # positions.  relu(max_t(x_t @ w) + b) == max_t(relu(x_t @ w + b)) exactly
    # (bias common to all taps, ReLU monotone), so bias/ReLU is applied once.
    w = w_ref[...]
    y = jnp.dot(x00_ref[...], w, preferred_element_type=jnp.float32)
    y = jnp.maximum(y, jnp.dot(x01_ref[...], w,
                               preferred_element_type=jnp.float32))
    y = jnp.maximum(y, jnp.dot(x10_ref[...], w,
                               preferred_element_type=jnp.float32))
    y = jnp.maximum(y, jnp.dot(x11_ref[...], w,
                               preferred_element_type=jnp.float32))
    o_ref[...] = jnp.maximum(y + b_ref[...], 0.0).astype(o_ref.dtype)


def conv3x3_relu_maxpool(x, w, b):
    # Conv(3x3, pad=1) + ReLU + MaxPool2d(2, 2), fused in one kernel.
    n, h, wd, cin = x.shape
    cout = w.shape[-1]
    h2, w2 = h // 2, wd // 2
    xp = jnp.pad(x, ((0, 0), (1, 1), (1, 1), (0, 0)))
    wm = w.reshape(9 * cin, cout)
    k = 9 * cin
    m = n * h2 * w2
    # im2col for the four pool-tap output grids (stride-2 gathers, JAX glue).
    xtaps = [_im2col(xp, h2, w2, dy, dx, 2, 2)
             for dy in (0, 1) for dx in (0, 1)]
    kp = k
    padded = []
    for xt in xtaps:
        xt, wm_p, kp = _pad_k(xt, wm, k)
        padded.append(xt)
    xtaps = padded
    wm, = (_pad_k(jnp.zeros((1, k), wm.dtype), wm, k)[1],)
    tm = _pick_m_tile(m)
    out = pl.pallas_call(
        _conv_mm_pool_kernel,
        out_shape=jax.ShapeDtypeStruct((m, cout), jnp.bfloat16),
        grid_spec=pltpu.PrefetchScalarGridSpec(
            num_scalar_prefetch=0,
            grid=(m // tm,),
            in_specs=[pl.BlockSpec((tm, kp), lambda i: (i, 0))
                      for _ in range(4)] + [
                pl.BlockSpec((kp, cout), lambda i: (0, 0)),
                pl.BlockSpec((1, cout), lambda i: (0, 0)),
            ],
            out_specs=pl.BlockSpec((tm, cout), lambda i: (i, 0)),
        ),
        compiler_params=pltpu.CompilerParams(
            dimension_semantics=("parallel",),
            vmem_limit_bytes=_VMEM_LIMIT),
    )(*xtaps, wm, b.reshape(1, cout))
    return out.reshape(n, h2, w2, cout)


# ----------------------------------- linear ---------------------------------
def _linear_kernel(x_ref, w_ref, b_ref, o_ref, acc_ref, *, relu):
    kk = pl.program_id(1)

    @pl.when(kk == 0)
    def _():
        acc_ref[...] = jnp.zeros_like(acc_ref)

    acc_ref[...] += jnp.dot(x_ref[...].astype(jnp.bfloat16), w_ref[...],
                            preferred_element_type=jnp.float32)

    @pl.when(kk == pl.num_programs(1) - 1)
    def _():
        out = acc_ref[...] + b_ref[...]
        if relu:
            out = jnp.maximum(out, 0.0)
        o_ref[...] = out.astype(o_ref.dtype)


def _pick_tile(dim, cap):
    if dim <= cap:
        return dim
    t = cap - (cap % 128)
    while t >= 128:
        if dim % t == 0:
            return t
        t -= 128
    return dim


def linear(x, w, b, relu):
    # x: (M, K) f32/bf16, w: (K, N) bf16, b: (N,) f32.  Output f32.
    M, K = x.shape
    N = w.shape[1]
    # bf16 weights + tk capped at 2048 keep the double-buffered weight tile at
    # 8 MiB (2048x1024 bf16 x2), comfortably inside the v7x VMEM budget while
    # the FC layers remain HBM-streaming-bound (tile size costs nothing).
    tk = _pick_tile(K, 2048)
    tn = _pick_tile(N, 1024)
    return pl.pallas_call(
        functools.partial(_linear_kernel, relu=relu),
        out_shape=jax.ShapeDtypeStruct((M, N), jnp.float32),
        grid_spec=pltpu.PrefetchScalarGridSpec(
            num_scalar_prefetch=0,
            grid=(N // tn, K // tk),
            in_specs=[
                pl.BlockSpec((M, tk), lambda j, kk: (0, kk)),
                pl.BlockSpec((tk, tn), lambda j, kk: (kk, j)),
                pl.BlockSpec((1, tn), lambda j, kk: (0, j)),
            ],
            out_specs=pl.BlockSpec((M, tn), lambda j, kk: (0, j)),
            scratch_shapes=[pltpu.VMEM((M, tn), jnp.float32)],
        ),
        compiler_params=pltpu.CompilerParams(
            dimension_semantics=("parallel", "arbitrary"),
            vmem_limit_bytes=_VMEM_LIMIT),
    )(x, w, b.reshape(1, N))


# --------------------------- adaptive average pool ---------------------------
def adaptive_avg_pool2d(x, out_hw):
    # Glue (general path only): PyTorch AdaptiveAvgPool2d bin rule.  For the
    # 32x32 input the incoming map is 1x1 and this path is bypassed by the
    # exact FC1 weight-folding shortcut in vgg16_forward.
    N, H, W, C = x.shape
    Ho, Wo = out_hw
    rows = []
    for i in range(Ho):
        hs, he = (i * H) // Ho, -((-(i + 1) * H) // Ho)
        cols = []
        for j in range(Wo):
            ws, we = (j * W) // Wo, -((-(j + 1) * W) // Wo)
            cols.append(jnp.mean(x[:, hs:he, ws:we, :], axis=(1, 2)))
        rows.append(jnp.stack(cols, axis=1))
    return jnp.stack(rows, axis=1)    # (N, Ho, Wo, C)


# -------------------------------- model params -------------------------------
_CONV_CFG = [
    [(3, 64), (64, 64)],
    [(64, 128), (128, 128)],
    [(128, 256), (256, 256), (256, 256)],
    [(256, 512), (512, 512), (512, 512)],
    [(512, 512), (512, 512), (512, 512)],
]
_POOL_HW = (8, 8)
_FC_CFG = [(512 * 8 * 8, 4096), (4096, 4096), (4096, 3)]  # module hard-codes 3 outputs


def init_params(key):
    # Weights are stored bf16 (MXU operand dtype; halves HBM/VMEM footprint),
    # biases stay f32 (bias/ReLU run in f32 after the f32-accumulated matmul).
    params = {"conv_blocks": [], "classifier": []}
    idx = 0
    for block in _CONV_CFG:
        layers = []
        for cin, cout in block:
            k = jax.random.fold_in(key, idx); idx += 1
            w = jax.random.normal(k, (3, 3, cin, cout), jnp.float32)
            w = (w * jnp.sqrt(2.0 / (cin * 9))).astype(jnp.bfloat16)
            b = jnp.zeros((cout,), jnp.float32)
            layers.append((w, b))
        params["conv_blocks"].append(layers)
    for cin, cout in _FC_CFG:
        k = jax.random.fold_in(key, idx); idx += 1
        w = jax.random.normal(k, (cin, cout), jnp.float32)
        w = (w * jnp.sqrt(2.0 / cin)).astype(jnp.bfloat16)
        b = jnp.zeros((cout,), jnp.float32)
        params["classifier"].append((w, b))
    return params


# ---------------------------------- forward ----------------------------------
def vgg16_forward(params, x_nchw):
    x = jnp.transpose(x_nchw, (0, 2, 3, 1)).astype(jnp.bfloat16)  # NCHW->NHWC, bf16
    for block in params["conv_blocks"]:
        for li, (w, b) in enumerate(block):
            if li == len(block) - 1:
                x = conv3x3_relu_maxpool(x, w, b)       # Conv+ReLU+MaxPool fused
            else:
                x = conv3x3_relu(x, w, b)               # Conv+ReLU
    n, h, wd, c = x.shape
    (w1, b1), (w2, b2), (w3, b3) = params["classifier"]
    rep = _POOL_HW[0] * _POOL_HW[1]
    if h == 1 and wd == 1 and w1.shape[0] == c * rep:
        # AdaptiveAvgPool2d((8,8)) on a 1x1 map is pure replication and the
        # NCHW flatten repeats each channel `rep` times contiguously; fold the
        # replicated rows of w1 (exact algebra, done in f32) -> FC1 becomes a
        # (N,512)@(512,4096) matmul, removing ~500 MB of weight streaming.
        w1_eff = (w1.astype(jnp.float32)
                    .reshape(c, rep, w1.shape[1]).sum(axis=1)
                    .astype(jnp.bfloat16))
        xf = x.reshape(n, c)
    else:
        xg = adaptive_avg_pool2d(x.astype(jnp.float32), _POOL_HW)  # (N, 8, 8, C)
        # Flatten matching torch's NCHW x.view(N, -1).
        xf = jnp.transpose(xg, (0, 3, 1, 2)).reshape(n, -1)
        w1_eff = w1
    x = linear(xf, w1_eff, b1, relu=True)
    # TODO(synk): Dropout(p=0.5) treated as inference-mode identity (no-op).
    x = linear(x, w2, b2, relu=True)
    # TODO(synk): Dropout(p=0.5) treated as inference-mode identity (no-op).
    logits = linear(x, w3, b3, relu=False)
    return logits


if __name__ == "__main__":
    key = jax.random.PRNGKey(0)
    pkey, xkey = jax.random.split(key)
    params = init_params(pkey)
    # Small but module-consistent input: batch=2, 3 channels, 32x32 spatial.
    x = jax.random.normal(xkey, (2, 3, 32, 32), jnp.float32)
    out = vgg16_forward(params, x)
    out = jax.block_until_ready(out)
    assert out.shape == (2, 3) and out.dtype == jnp.float32
    print("KERNEL_OK")
</pallas_src>

<mosaic_0001>
module attributes {stable_mosaic.version = 11 : i64} {
  func.func @_conv_mm_kernel(%arg0: i32, %arg1: memref<256x32xbf16, #tpu.memory_space<vmem>>, %arg2: memref<32x64xbf16, #tpu.memory_space<vmem>>, %arg3: memref<1x64xf32, #tpu.memory_space<vmem>>, %arg4: memref<256x64xbf16, #tpu.memory_space<vmem>>) attributes {dimension_semantics = [#tpu.dimension_semantics<parallel>], iteration_bounds = array<i64: 8>, scalar_prefetch = 0 : i64, scratch_operands = 0 : i64, tpu.core_type = #tpu.core_type<tc>, window_params = [{transform_indices = @transform_0, window_bounds = array<i64: 256, 32>}, {pipeline_mode = #tpu.pipeline_mode<synchronous>, transform_indices = @transform_1, window_bounds = array<i64: 32, 64>}, {pipeline_mode = #tpu.pipeline_mode<synchronous>, transform_indices = @transform_2, window_bounds = array<i64: 1, 64>}, {transform_indices = @transform_3, window_bounds = array<i64: 256, 64>}]} {
    %c0 = arith.constant 0 : index
    %c0_0 = arith.constant 0 : index
    %0 = vector.load %arg1[%c0, %c0_0] : memref<256x32xbf16, #tpu.memory_space<vmem>>, vector<256x32xbf16>
    %c0_1 = arith.constant 0 : index
    %c0_2 = arith.constant 0 : index
    %1 = vector.load %arg2[%c0_1, %c0_2] : memref<32x64xbf16, #tpu.memory_space<vmem>>, vector<32x64xbf16>
    %cst = arith.constant dense<0.000000e+00> : vector<256x64xf32>
    %2 = tpu.matmul %0, %1, %cst {dimension_numbers = #tpu.dot_dimension_numbers<[1], [0], [0], [1], [0, 0, 1, 1], [], []>} : vector<256x32xbf16>, vector<32x64xbf16>, vector<256x64xf32> -> vector<256x64xf32>
    %c0_3 = arith.constant 0 : index
    %c0_4 = arith.constant 0 : index
    %3 = vector.load %arg3[%c0_3, %c0_4] : memref<1x64xf32, #tpu.memory_space<vmem>>, vector<1x64xf32>
    %4 = vector.broadcast %3 : vector<1x64xf32> to vector<256x64xf32>
    %5 = arith.addf %2, %4 : vector<256x64xf32>
    %cst_5 = arith.constant 0.000000e+00 : f32
    %6 = vector.broadcast %cst_5 : f32 to vector<256x64xf32>
    %7 = arith.maximumf %5, %6 : vector<256x64xf32>
    %8 = arith.truncf %7 : vector<256x64xf32> to vector<256x64xbf16>
    %c0_6 = arith.constant 0 : index
    %c0_7 = arith.constant 0 : index
    %9 = vector.load %arg4[%c0_6, %c0_7] : memref<256x64xbf16, #tpu.memory_space<vmem>>, vector<256x64xbf16>
    tpu.vector_store %arg4[%c0_6, %c0_7], %8 {strides = array<i32>} : memref<256x64xbf16, #tpu.memory_space<vmem>>, vector<256x64xbf16>,
    return
  }
  func.func @transform_0(%arg0: i32) -> (i32, i32) {
    %c0_i32 = arith.constant 0 : i32
    %c0_i32_0 = arith.constant 0 : i32
    return %arg0, %c0_i32 : i32, i32
  }
  func.func @transform_1(%arg0: i32) -> (i32, i32) {
    %c0_i32 = arith.constant 0 : i32
    %c0_i32_0 = arith.constant 0 : i32
    %c0_i32_1 = arith.constant 0 : i32
    return %c0_i32, %c0_i32_0 : i32, i32
  }
  func.func @transform_2(%arg0: i32) -> (i32, i32) {
    %c0_i32 = arith.constant 0 : i32
    %c0_i32_0 = arith.constant 0 : i32
    %c0_i32_1 = arith.constant 0 : i32
    return %c0_i32, %c0_i32_0 : i32, i32
  }
  func.func @transform_3(%arg0: i32) -> (i32, i32) {
    %c0_i32 = arith.constant 0 : i32
    %c0_i32_0 = arith.constant 0 : i32
    return %arg0, %c0_i32 : i32, i32
  }
}

</mosaic_0001>

<bundles_post_ra>
// kernel: tpu_custom_call.1
= control target key start
LH: loop header
LB: loop body
LE: loop exit
PB: predicated region body
PF: predicated region fallthrough
CT: control target
= control target key end

     0   :  { %s991_s12 = smov 0   ;;  %s1158_s0 = inlined_call_operand.vmem [shape: bf16[2048,32], index: 0, kind: input, shape index: {}]   ;;  %s1159_s1 = inlined_call_operand.vmem [shape: bf16[32,64], index: 1, kind: input, shape index: {}]   ;;  %s1160_s2 = inlined_call_operand.vmem [shape: f32[1,64], index: 2, kind: input, shape index: {}]   ;;  %s1161_s3 = inlined_call_operand.vmem [shape: bf16[2048,64], index: 3, kind: output, shape index: {}]  }
   0x1 LB: > { %s769_s13 = sadd.s32 4294967295, %s969_s12   ;;  %p773_p0 = scmp.ge.s32.totalorder %s969_s12, 1  ;;  %s969_s12 = sphi %s991_s12, %s13_s12  }
   0x2   : > { %p138_p1 = scmp.lt.s32.totalorder %s969_s12, 9 }
   0x4   : > { %p139_p2 = pnand %p773_p0, %p138_p1 }
   0x5   : > { %v945_v0 = vld [vmem:[%s1159_s1] sm:$0xff] (!%p139_p2)   ;;  %s774_s16 = sshll.u32 (!%p139_p2), %s769_s13, 5  ;;  %v946_v1 = vld [vmem:[%s1159_s1 + $0x8] sm:$0xff] (!%p139_p2)   ;;  %vm310_vm0 = vcmask (!%p139_p2), 261120   ;;  %vm680_vm1 = vcmask (!%p139_p2), 519168  }
   0x6   : > { %142 = sbr.rel (%p139_p2) target bundleno = 265 (0x109), region = 32  ;;  %p163_p3 = scmp.lt.s32.totalorder (!%p139_p2), %s774_s16, 255  ;;  %897 = vmatprep.subr.bf16.mxu0 (!%p139_p2), %v945_v0  ;;  %933 = vmatprep.subr.bf16.mxu1 (!%p139_p2), %v945_v0  ;;  %v1050_v18 = vld [vmem:[%s1160_s2] ss:$0 sm:$0xff] (!%p139_p2) }
   0x7   : > { %898 = vmatpush3.bf16.msra.mxu0 (!%p139_p2), %v945_v0  ;;  %935 = vmatpush3.bf16.msra.mxu1 (!%p139_p2), %v945_v0 }
   0x8   : > { %899 = vmatprep.subr.bf16.mxu0 (!%p139_p2), %v946_v1  ;;  %934 = vmatprep.subr.bf16.mxu1 (!%p139_p2), %v946_v1 }
   0xb   : > { %900 = vmatpush3.bf16.msra.mxu0 (!%p139_p2), %v946_v1  ;;  %936 = vmatpush3.bf16.msra.mxu1 (!%p139_p2), %v946_v1 }
   0xd   : > { %s1163_s16 = smov (!%p163_p3, %s774_s16), 255 }
   0xe   : > { %s775_s19 = sshll.u32 %s1163_s16, 2 }
   0xf   : > { %s1013_s22 = scalar_lea.vmem %s1158_s0, %s775_s19  ;;  %s1062_s27 = scalar_lea.vmem %s1161_s3, %s775_s19 }
  0x10   : > { %v947_v2 = vld [vmem:[%s1013_s22] sm:$0xff]   ;;  %v949_v4 = vld [vmem:[%s1013_s22 + $0x8] sm:$0xff]   ;;  %v951_v6 = vld [vmem:[%s1013_s22 + $0x10] sm:$0xff]  }
  0x11   : > { %v948_v3 = vld [vmem:[%s1013_s22 + $0x40] sm:$0xff]   ;;  %901 = vmatprep.mubr.msk.bf16.mxu0 %vm310_vm0, %v947_v2  ;;  %v950_v5 = vld [vmem:[%s1013_s22 + $0x48] sm:$0xff]   ;;  %v952_v7 = vld [vmem:[%s1013_s22 + $0x50] sm:$0xff]  }
  0x12   : > { %917 = vmatprep.mubr.msk.bf16.mxu1 %vm310_vm0, %v948_v3  ;;  %902 = vmatmul.mubr.msk.bf16.vlgmr.msra.gmra.mrb[0].mxu0 %vm310_vm0, %v949_v4  ;;  %v953_v8 = vld [vmem:[%s1013_s22 + $0x18] sm:$0xff]   ;;  %v955_v10 = vld [vmem:[%s1013_s22 + $0x20] sm:$0xff]   ;;  %v957_v12 = vld [vmem:[%s1013_s22 + $0x28] sm:$0xff]  }
  0x13   : > { %918 = vmatmul.mubr.msk.bf16.vlgmr.msra.gmra.mrb[0].mxu1 %vm310_vm0, %v950_v5  ;;  %905 = vmatprep.mubr.msk.bf16.mxu0 %vm310_vm0, %v951_v6  ;;  %v954_v9 = vld [vmem:[%s1013_s22 + $0x58] sm:$0xff]   ;;  %v956_v11 = vld [vmem:[%s1013_s22 + $0x60] sm:$0xff]   ;;  %v958_v13 = vld [vmem:[%s1013_s22 + $0x68] sm:$0xff]  }
  0x14   : > { %921 = vmatprep.mubr.msk.bf16.mxu1 %vm310_vm0, %v952_v7  ;;  %v959_v14 = vld [vmem:[%s1013_s22 + $0x30] sm:$0xff]   ;;  %v961_v16 = vld [vmem:[%s1013_s22 + $0x38] sm:$0xff]  }
  0x15   : > { %v960_v15 = vld [vmem:[%s1013_s22 + $0x70] sm:$0xff]   ;;  %v962_v17 = vld [vmem:[%s1013_s22 + $0x78] sm:$0xff]  }
  0x1a   : > { %906 = vmatmul.mubr.msk.bf16.gmra.mrb[4].mxu0 %vm310_vm0, %v953_v8 }
  0x1b   : > { %922 = vmatmul.mubr.msk.bf16.gmra.mrb[4].mxu1 %vm310_vm0, %v954_v9  ;;  %909 = vmatprep.mubr.msk.bf16.mxu0 %vm310_vm0, %v955_v10 }
  0x1c   : > { %925 = vmatprep.mubr.msk.bf16.mxu1 %vm310_vm0, %v956_v11 }
  0x22   : > { %910 = vmatmul.mubr.msk.bf16.gmra.mrb[8].mxu0 %vm310_vm0, %v957_v12 }
  0x23   : > { %926 = vmatmul.mubr.msk.bf16.gmra.mrb[8].mxu1 %vm310_vm0, %v958_v13  ;;  %913 = vmatprep.mubr.msk.bf16.mxu0 %vm310_vm0, %v959_v14 }
  0x24   : > { %929 = vmatprep.mubr.msk.bf16.mxu1 %vm310_vm0, %v960_v15 }
  0x2a   : > { %914 = vmatmul.mubr.msk.bf16.gmra.mrb[12].mxu0 %vm310_vm0, %v961_v16 }
  0x2b   : > { %930 = vmatmul.mubr.msk.bf16.gmra.mrb[12].mxu1 %vm310_vm0, %v962_v17 }
  0xe5   : > { %v903_v19 = vpop.f32.mrb[0].mxu0 }
  0xe6   : > { %v402_v20 = vadd.f32 %v903_v19, %v1050_v18  ;;  %v919_v21 = vpop.f32.mrb[0].mxu1  ;;  %v393_v22 = vpop.f32.mrb[1].mxu0 }
  0xe7   : > { %v466_v23 = vadd.f32 %v919_v21, %v1050_v18  ;;  %v394_v24 = vadd.f32 %v1050_v18, %v393_v22  ;;  %v457_v25 = vpop.f32.mrb[1].mxu1  ;;  %v904_v26 = vpop.f32.mrb[2].mxu0 }
  0xe8   : > { %v522_v27 = vmax.f32 %v402_v20, 0.0  ;;  %v458_v28 = vadd.f32 %v1050_v18, %v457_v25  ;;  %v405_v29 = vadd.f32 %v904_v26, %v1050_v18  ;;  %v920_v30 = vpop.f32.mrb[2].mxu1  ;;  %v396_v31 = vpop.f32.mrb[3].mxu0 }
  0xe9   : > { %v538_v32 = vmax.f32 %v466_v23, 0.0  ;;  %v520_v33 = vmax.f32 %v394_v24, 0.0  ;;  %v469_v34 = vadd.f32 %v920_v30, %v1050_v18  ;;  %v397_v35 = vadd.f32 %v1050_v18, %v396_v31  ;;  %v460_v36 = vpop.f32.mrb[3].mxu1 }
  0xea   : > { %v849_v37 = vpack.c.bf16 %v522_v27, %v522_v27  ;;  %v536_v38 = vmax.f32 %v458_v28, 0.0  ;;  %v523_v39 = vmax.f32 %v405_v29, 0.0  ;;  %v461_v40 = vadd.f32 %v1050_v18, %v460_v36 }
  0xeb   : > { %v865_v41 = vpack.c.bf16 %v538_v32, %v538_v32  ;;  %v847_v42 = vpack.c.bf16 %v520_v33, %v520_v33  ;;  %v539_v43 = vmax.f32 %v469_v34, 0.0  ;;  %v521_v44 = vmax.f32 %v397_v35, 0.0 }
  0xec   : > { %683 = vst.msk [vmem:[%s1062_s27 + $0x8] sm:$0xf] %vm680_vm1, %v849_v37  ;;  %v863_v45 = vpack.c.bf16 %v536_v38, %v536_v38  ;;  %v850_v46 = vpack.c.bf16 %v523_v39, %v523_v39  ;;  %v537_v47 = vmax.f32 %v461_v40, 0.0 }
  0xed   : > { %699 = vst.msk [vmem:[%s1062_s27 + $0x48] sm:$0xf] %vm680_vm1, %v865_v41  ;;  %681 = vst.msk [vmem:[%s1062_s27] sm:$0xf] %vm680_vm1, %v847_v42  ;;  %v866_v48 = vpack.c.bf16 %v539_v43, %v539_v43  ;;  %v848_v49 = vpack.c.bf16 %v521_v44, %v521_v44  ;;  %v907_v50 = vpop.f32.mrb[4].mxu0 }
  0xee   : > { %697 = vst.msk [vmem:[%s1062_s27 + $0x40] sm:$0xf] %vm680_vm1, %v863_v45  ;;  %684 = vst.msk [vmem:[%s1062_s27 + $0xc] sm:$0xf] %vm680_vm1, %v850_v46  ;;  %v864_v51 = vpack.c.bf16 %v537_v47, %v537_v47  ;;  %v418_v52 = vadd.f32 %v907_v50, %v1050_v18  ;;  %v923_v53 = vpop.f32.mrb[4].mxu1  ;;  %v409_v54 = vpop.f32.mrb[5].mxu0 }
  0xef   : > { %700 = vst.msk [vmem:[%s1062_s27 + $0x4c] sm:$0xf] %vm680_vm1, %v866_v48  ;;  %682 = vst.msk [vmem:[%s1062_s27 + $0x4] sm:$0xf] %vm680_vm1, %v848_v49  ;;  %v482_v55 = vadd.f32 %v923_v53, %v1050_v18  ;;  %v410_v56 = vadd.f32 %v1050_v18, %v409_v54  ;;  %v473_v57 = vpop.f32.mrb[5].mxu1  ;;  %v908_v58 = vpop.f32.mrb[6].mxu0 }
  0xf0   : > { %698 = vst.msk [vmem:[%s1062_s27 + $0x44] sm:$0xf] %vm680_vm1, %v864_v51  ;;  %v526_v59 = vmax.f32 %v418_v52, 0.0  ;;  %v474_v60 = vadd.f32 %v1050_v18, %v473_v57  ;;  %v421_v61 = vadd.f32 %v908_v58, %v1050_v18  ;;  %v924_v62 = vpop.f32.mrb[6].mxu1  ;;  %v412_v63 = vpop.f32.mrb[7].mxu0 }
  0xf1   : > { %v542_v0 = vmax.f32 %v482_v55, 0.0  ;;  %v524_v1 = vmax.f32 %v410_v56, 0.0  ;;  %v485_v2 = vadd.f32 %v924_v62, %v1050_v18  ;;  %v413_v3 = vadd.f32 %v1050_v18, %v412_v63  ;;  %v476_v4 = vpop.f32.mrb[7].mxu1 }
  0xf2   : > { %v853_v5 = vpack.c.bf16 %v526_v59, %v526_v59  ;;  %v540_v6 = vmax.f32 %v474_v60, 0.0  ;;  %v527_v7 = vmax.f32 %v421_v61, 0.0  ;;  %v477_v8 = vadd.f32 %v1050_v18, %v476_v4 }
  0xf3   : > { %v869_v9 = vpack.c.bf16 %v542_v0, %v542_v0  ;;  %v851_v10 = vpack.c.bf16 %v524_v1, %v524_v1  ;;  %v543_v11 = vmax.f32 %v485_v2, 0.0  ;;  %v525_v12 = vmax.f32 %v413_v3, 0.0 }
  0xf4   : > { %687 = vst.msk [vmem:[%s1062_s27 + $0x18] sm:$0xf] %vm680_vm1, %v853_v5  ;;  %v867_v13 = vpack.c.bf16 %v540_v6, %v540_v6  ;;  %v854_v14 = vpack.c.bf16 %v527_v7, %v527_v7  ;;  %v541_v15 = vmax.f32 %v477_v8, 0.0 }
  0xf5   : > { %703 = vst.msk [vmem:[%s1062_s27 + $0x58] sm:$0xf] %vm680_vm1, %v869_v9  ;;  %685 = vst.msk [vmem:[%s1062_s27 + $0x10] sm:$0xf] %vm680_vm1, %v851_v10  ;;  %v870_v16 = vpack.c.bf16 %v543_v11, %v543_v11  ;;  %v852_v17 = vpack.c.bf16 %v525_v12, %v525_v12  ;;  %v911_v19 = vpop.f32.mrb[8].mxu0 }
  0xf6   : > { %701 = vst.msk [vmem:[%s1062_s27 + $0x50] sm:$0xf] %vm680_vm1, %v867_v13  ;;  %688 = vst.msk [vmem:[%s1062_s27 + $0x1c] sm:$0xf] %vm680_vm1, %v854_v14  ;;  %v868_v20 = vpack.c.bf16 %v541_v15, %v541_v15  ;;  %v434_v21 = vadd.f32 %v911_v19, %v1050_v18  ;;  %v927_v22 = vpop.f32.mrb[8].mxu1  ;;  %v425_v23 = vpop.f32.mrb[9].mxu0 }
  0xf7   : > { %704 = vst.msk [vmem:[%s1062_s27 + $0x5c] sm:$0xf] %vm680_vm1, %v870_v16  ;;  %686 = vst.msk [vmem:[%s1062_s27 + $0x14] sm:$0xf] %vm680_vm1, %v852_v17  ;;  %v498_v24 = vadd.f32 %v927_v22, %v1050_v18  ;;  %v426_v25 = vadd.f32 %v1050_v18, %v425_v23  ;;  %v489_v26 = vpop.f32.mrb[9].mxu1  ;;  %v912_v27 = vpop.f32.mrb[10].mxu0 }
  0xf8   : > { %702 = vst.msk [vmem:[%s1062_s27 + $0x54] sm:$0xf] %vm680_vm1, %v868_v20  ;;  %v530_v28 = vmax.f32 %v434_v21, 0.0  ;;  %v490_v29 = vadd.f32 %v1050_v18, %v489_v26  ;;  %v437_v30 = vadd.f32 %v912_v27, %v1050_v18  ;;  %v928_v31 = vpop.f32.mrb[10].mxu1  ;;  %v428_v32 = vpop.f32.mrb[11].mxu0 }
  0xf9   : > { %v546_v33 = vmax.f32 %v498_v24, 0.0  ;;  %v528_v34 = vmax.f32 %v426_v25, 0.0  ;;  %v501_v35 = vadd.f32 %v928_v31, %v1050_v18  ;;  %v429_v36 = vadd.f32 %v1050_v18, %v428_v32  ;;  %v492_v37 = vpop.f32.mrb[11].mxu1 }
  0xfa   : > { %v857_v38 = vpack.c.bf16 %v530_v28, %v530_v28  ;;  %v544_v39 = vmax.f32 %v490_v29, 0.0  ;;  %v531_v40 = vmax.f32 %v437_v30, 0.0  ;;  %v493_v41 = vadd.f32 %v1050_v18, %v492_v37 }
  0xfb   : > { %v873_v42 = vpack.c.bf16 %v546_v33, %v546_v33  ;;  %v855_v43 = vpack.c.bf16 %v528_v34, %v528_v34  ;;  %v547_v44 = vmax.f32 %v501_v35, 0.0  ;;  %v529_v45 = vmax.f32 %v429_v36, 0.0 }
  0xfc   : > { %691 = vst.msk [vmem:[%s1062_s27 + $0x28] sm:$0xf] %vm680_vm1, %v857_v38  ;;  %v871_v46 = vpack.c.bf16 %v544_v39, %v544_v39  ;;  %v858_v47 = vpack.c.bf16 %v531_v40, %v531_v40  ;;  %v545_v48 = vmax.f32 %v493_v41, 0.0 }
  0xfd   : > { %707 = vst.msk [vmem:[%s1062_s27 + $0x68] sm:$0xf] %vm680_vm1, %v873_v42  ;;  %689 = vst.msk [vmem:[%s1062_s27 + $0x20] sm:$0xf] %vm680_vm1, %v855_v43  ;;  %v874_v49 = vpack.c.bf16 %v547_v44, %v547_v44  ;;  %v856_v50 = vpack.c.bf16 %v529_v45, %v529_v45  ;;  %v915_v51 = vpop.f32.mrb[12].mxu0 }
  0xfe   : > { %705 = vst.msk [vmem:[%s1062_s27 + $0x60] sm:$0xf] %vm680_vm1, %v871_v46  ;;  %692 = vst.msk [vmem:[%s1062_s27 + $0x2c] sm:$0xf] %vm680_vm1, %v858_v47  ;;  %v872_v52 = vpack.c.bf16 %v545_v48, %v545_v48  ;;  %v450_v53 = vadd.f32 %v915_v51, %v1050_v18  ;;  %v931_v54 = vpop.f32.mrb[12].mxu1  ;;  %v441_v55 = vpop.f32.mrb[13].mxu0 }
  0xff   : > { %708 = vst.msk [vmem:[%s1062_s27 + $0x6c] sm:$0xf] %vm680_vm1, %v874_v49  ;;  %690 = vst.msk [vmem:[%s1062_s27 + $0x24] sm:$0xf] %vm680_vm1, %v856_v50  ;;  %v514_v56 = vadd.f32 %v931_v54, %v1050_v18  ;;  %v442_v57 = vadd.f32 %v1050_v18, %v441_v55  ;;  %v505_v58 = vpop.f32.mrb[13].mxu1  ;;  %v916_v59 = vpop.f32.mrb[14].mxu0 }
 0x100   : > { %706 = vst.msk [vmem:[%s1062_s27 + $0x64] sm:$0xf] %vm680_vm1, %v872_v52  ;;  %v534_v60 = vmax.f32 %v450_v53, 0.0  ;;  %v506_v61 = vadd.f32 %v1050_v18, %v505_v58  ;;  %v453_v62 = vadd.f32 %v916_v59, %v1050_v18  ;;  %v932_v63 = vpop.f32.mrb[14].mxu1  ;;  %v444_v0 = vpop.f32.mrb[15].mxu0 }
 0x101   : > { %v550_v1 = vmax.f32 %v514_v56, 0.0  ;;  %v532_v2 = vmax.f32 %v442_v57, 0.0  ;;  %v517_v3 = vadd.f32 %v932_v63, %v1050_v18  ;;  %v445_v4 = vadd.f32 %v1050_v18, %v444_v0  ;;  %v508_v5 = vpop.f32.mrb[15].mxu1 }
 0x102   : > { %v861_v6 = vpack.c.bf16 %v534_v60, %v534_v60  ;;  %v548_v7 = vmax.f32 %v506_v61, 0.0  ;;  %v535_v8 = vmax.f32 %v453_v62, 0.0  ;;  %v509_v9 = vadd.f32 %v1050_v18, %v508_v5 }
 0x103   : > { %v877_v10 = vpack.c.bf16 %v550_v1, %v550_v1  ;;  %v859_v11 = vpack.c.bf16 %v532_v2, %v532_v2  ;;  %v551_v12 = vmax.f32 %v517_v3, 0.0  ;;  %v533_v13 = vmax.f32 %v445_v4, 0.0 }
 0x104   : > { %695 = vst.msk [vmem:[%s1062_s27 + $0x38] sm:$0xf] %vm680_vm1, %v861_v6  ;;  %v875_v14 = vpack.c.bf16 %v548_v7, %v548_v7  ;;  %v862_v15 = vpack.c.bf16 %v535_v8, %v535_v8  ;;  %v549_v16 = vmax.f32 %v509_v9, 0.0 }
 0x105   : > { %711 = vst.msk [vmem:[%s1062_s27 + $0x78] sm:$0xf] %vm680_vm1, %v877_v10  ;;  %693 = vst.msk [vmem:[%s1062_s27 + $0x30] sm:$0xf] %vm680_vm1, %v859_v11  ;;  %v878_v17 = vpack.c.bf16 %v551_v12, %v551_v12  ;;  %v860_v19 = vpack.c.bf16 %v533_v13, %v533_v13 }
 0x106   : > { %709 = vst.msk [vmem:[%s1062_s27 + $0x70] sm:$0xf] %vm680_vm1, %v875_v14  ;;  %696 = vst.msk [vmem:[%s1062_s27 + $0x3c] sm:$0xf] %vm680_vm1, %v862_v15  ;;  %v876_v18 = vpack.c.bf16 %v549_v16, %v549_v16 }
 0x107   : > { %712 = vst.msk [vmem:[%s1062_s27 + $0x7c] sm:$0xf] %vm680_vm1, %v878_v17  ;;  %694 = vst.msk [vmem:[%s1062_s27 + $0x34] sm:$0xf] %vm680_vm1, %v860_v19 }
 0x108   : > { %710 = vst.msk [vmem:[%s1062_s27 + $0x74] sm:$0xf] %vm680_vm1, %v876_v18 }
 0x109 PF: > { %s13_s12 = sadd.s32 1, %s969_s12  }
 0x10a   : > { %p10_p4 = scmp.ge.s32.totalorder %s13_s12, 10  }
 0x10c   :  { %12 = sbr.rel (!%p10_p4) target bundleno = 1 (0x1), region = 62 }

</bundles_post_ra>
